<compile_context>
chip_gen: v7x
topology: tpu7x:2x2x1
jax: 0.10.0
libtpu: 0.0.40
codegen_flags: <defaults>
</compile_context>

<pallas_src>
import functools

import jax
import jax.numpy as jnp
from jax.experimental import pallas as pl
from jax.experimental.pallas import tpu as pltpu

LANE = 128       # lane width / MXU-friendly alignment for the hidden dim
TILE_B = 1024    # batch rows per grid step for large batches


def _round_up(n: int, m: int) -> int:
    return (n + m - 1) // m * m


def mlp_kernel(x_ref, w1_ref, b1_ref, w2_ref, b2_ref, o_ref):
    """One batch tile: relu(x @ W1 + b1) @ W2 + b2.

    x is (TB, in_dim) with its natural feature width; W1 is (in_dim, hid_p)
    with the hidden dim zero-padded to a lane multiple; W2 is (hid_p, out)
    with the padded hidden rows zero, so the narrow output is exact.
    """
    # linear1 on the MXU, f32 accumulation: (TB, in_dim) @ (in_dim, hid_p).
    h = jnp.dot(x_ref[...], w1_ref[...], preferred_element_type=jnp.float32)
    h = jnp.maximum(h + b1_ref[...], 0.0)          # bias + ReLU on the VPU
    # linear2: (TB, hid_p) @ (hid_p, out) -> narrow (TB, out) result.
    y = jnp.dot(h, w2_ref[...], preferred_element_type=jnp.float32)
    o_ref[...] = (y + b2_ref[...]).astype(o_ref.dtype)


@jax.jit
def net_forward(x, w1_p, b1_p, w2_p, b2_p):
    """Pallas forward pass. x: (B, in_dim) f32. Returns (B, output_size)."""
    B, in_dim = x.shape
    hid_p = w1_p.shape[1]
    out_dim = w2_p.shape[1]

    # Tile selection: single block for modest batches, TILE_B rows otherwise.
    if B <= TILE_B:
        tile_b = _round_up(max(B, 8), 8)   # sublane-aligned single block
    else:
        tile_b = TILE_B
    b_pad = _round_up(B, tile_b)

    # Only batch rows are padded (features stay at their natural width).
    if b_pad != B:
        x_in = jnp.zeros((b_pad, in_dim), x.dtype).at[:B, :].set(x)
    else:
        x_in = x

    grid = (b_pad // tile_b,)
    out = pl.pallas_call(
        mlp_kernel,
        out_shape=jax.ShapeDtypeStruct((b_pad, out_dim), x.dtype),
        grid=grid,
        in_specs=[
            # x: tiled over batch, full (unpadded) feature width.
            pl.BlockSpec((tile_b, in_dim), lambda i: (i, 0),
                         memory_space=pltpu.MemorySpace.VMEM),
            # Weights/biases: whole arrays, resident in VMEM (constant index_map
            # -> DMA'd once, ~tens of KB total).
            pl.BlockSpec((in_dim, hid_p), lambda i: (0, 0),
                         memory_space=pltpu.MemorySpace.VMEM),
            pl.BlockSpec((1, hid_p), lambda i: (0, 0),
                         memory_space=pltpu.MemorySpace.VMEM),
            pl.BlockSpec((hid_p, out_dim), lambda i: (0, 0),
                         memory_space=pltpu.MemorySpace.VMEM),
            pl.BlockSpec((1, out_dim), lambda i: (0, 0),
                         memory_space=pltpu.MemorySpace.VMEM),
        ],
        # Narrow output written directly: full last dim (== out_dim) is legal.
        out_specs=pl.BlockSpec((tile_b, out_dim), lambda i: (i, 0),
                               memory_space=pltpu.MemorySpace.VMEM),
        compiler_params=pltpu.CompilerParams(
            # Batch tiles are independent; shards across TCs on multi-core parts.
            dimension_semantics=("parallel",)),
    )(x_in, w1_p, b1_p, w2_p, b2_p)

    return out[:B, :]


def init_params(key, input_size, hidden_size, output_size):
    """nn.Linear-style uniform(-1/sqrt(fan_in), 1/sqrt(fan_in)) init.

    Returns (real_params, kernel_params). Kernel params keep the input dim at
    its natural width, pad only the hidden dim to a lane multiple (zeros in the
    padded lanes/rows), and keep the output dim narrow. Weights are stored
    (in_features, out_features), i.e. transposed vs PyTorch, so the kernel
    computes plain x @ W + b.
    """
    k1, k2, k3, k4 = jax.random.split(key, 4)
    bound1 = 1.0 / jnp.sqrt(input_size)
    bound2 = 1.0 / jnp.sqrt(hidden_size)
    w1 = jax.random.uniform(k1, (input_size, hidden_size), jnp.float32, -bound1, bound1)
    b1 = jax.random.uniform(k2, (hidden_size,), jnp.float32, -bound1, bound1)
    w2 = jax.random.uniform(k3, (hidden_size, output_size), jnp.float32, -bound2, bound2)
    b2 = jax.random.uniform(k4, (output_size,), jnp.float32, -bound2, bound2)

    hid_p = _round_up(hidden_size, LANE)
    # Hidden dim padded with zeros; padded h lanes are relu(0+0)=0 and W2's
    # padded rows are zero, so the narrow output stays exact.
    w1_p = jnp.zeros((input_size, hid_p), jnp.float32).at[:, :hidden_size].set(w1)
    b1_p = jnp.zeros((1, hid_p), jnp.float32).at[0, :hidden_size].set(b1)
    w2_p = jnp.zeros((hid_p, output_size), jnp.float32).at[:hidden_size, :].set(w2)
    b2_p = b2.reshape(1, output_size)
    return (w1, b1, w2, b2), (w1_p, b1_p, w2_p, b2_p)


if __name__ == "__main__":
    # CartPole-like sizes: state dim 4, hidden 32, 2 actions; batch of 256
    # (e.g. vectorized envs) exercises the single-block fast path.
    batch, input_size, hidden_size, output_size = 256, 4, 32, 2

    key = jax.random.PRNGKey(0)
    kx, kp = jax.random.split(key)
    x = jax.random.normal(kx, (batch, input_size), dtype=jnp.float32)
    (w1, b1, w2, b2), (w1_p, b1_p, w2_p, b2_p) = init_params(
        kp, input_size, hidden_size, output_size)

    out = net_forward(x, w1_p, b1_p, w2_p, b2_p)
    jax.block_until_ready(out)

    # Pure-JAX reference check against the unpadded parameters.
    ref = jnp.maximum(x @ w1 + b1, 0.0) @ w2 + b2
    assert out.shape == (batch, output_size)
    assert jnp.allclose(out, ref, atol=1e-5), "mismatch vs reference"

    print("KERNEL_OK")
</pallas_src>

<mosaic_0001>
module attributes {stable_mosaic.version = 11 : i64} {
  func.func @mlp_kernel(%arg0: i32, %arg1: memref<256x4xf32, #tpu.memory_space<vmem>>, %arg2: memref<4x128xf32, #tpu.memory_space<vmem>>, %arg3: memref<1x128xf32, #tpu.memory_space<vmem>>, %arg4: memref<128x2xf32, #tpu.memory_space<vmem>>, %arg5: memref<1x2xf32, #tpu.memory_space<vmem>>, %arg6: memref<256x2xf32, #tpu.memory_space<vmem>>) attributes {dimension_semantics = [#tpu.dimension_semantics<parallel>], iteration_bounds = array<i64: 1>, scalar_prefetch = 0 : i64, scratch_operands = 0 : i64, tpu.core_type = #tpu.core_type<tc>, window_params = [{transform_indices = @transform_0, window_bounds = array<i64: 256, 4>}, {pipeline_mode = #tpu.pipeline_mode<synchronous>, transform_indices = @transform_1, window_bounds = array<i64: 4, 128>}, {pipeline_mode = #tpu.pipeline_mode<synchronous>, transform_indices = @transform_2, window_bounds = array<i64: 1, 128>}, {pipeline_mode = #tpu.pipeline_mode<synchronous>, transform_indices = @transform_3, window_bounds = array<i64: 128, 2>}, {pipeline_mode = #tpu.pipeline_mode<synchronous>, transform_indices = @transform_4, window_bounds = array<i64: 1, 2>}, {transform_indices = @transform_5, window_bounds = array<i64: 256, 2>}]} {
    %c0 = arith.constant 0 : index
    %c0_0 = arith.constant 0 : index
    %0 = vector.load %arg1[%c0, %c0_0] : memref<256x4xf32, #tpu.memory_space<vmem>>, vector<256x4xf32>
    %c0_1 = arith.constant 0 : index
    %c0_2 = arith.constant 0 : index
    %1 = vector.load %arg2[%c0_1, %c0_2] : memref<4x128xf32, #tpu.memory_space<vmem>>, vector<4x128xf32>
    %cst = arith.constant dense<0.000000e+00> : vector<256x128xf32>
    %2 = tpu.matmul %0, %1, %cst {dimension_numbers = #tpu.dot_dimension_numbers<[1], [0], [0], [1], [0, 0, 1, 1], [], []>} : vector<256x4xf32>, vector<4x128xf32>, vector<256x128xf32> -> vector<256x128xf32>
    %c0_3 = arith.constant 0 : index
    %c0_4 = arith.constant 0 : index
    %3 = vector.load %arg3[%c0_3, %c0_4] : memref<1x128xf32, #tpu.memory_space<vmem>>, vector<1x128xf32>
    %4 = vector.broadcast %3 : vector<1x128xf32> to vector<256x128xf32>
    %5 = arith.addf %2, %4 : vector<256x128xf32>
    %cst_5 = arith.constant 0.000000e+00 : f32
    %6 = vector.broadcast %cst_5 : f32 to vector<256x128xf32>
    %7 = arith.maximumf %5, %6 : vector<256x128xf32>
    %c0_6 = arith.constant 0 : index
    %c0_7 = arith.constant 0 : index
    %8 = vector.load %arg4[%c0_6, %c0_7] : memref<128x2xf32, #tpu.memory_space<vmem>>, vector<128x2xf32>
    %cst_8 = arith.constant dense<0.000000e+00> : vector<256x2xf32>
    %9 = tpu.matmul %7, %8, %cst_8 {dimension_numbers = #tpu.dot_dimension_numbers<[1], [0], [0], [1], [0, 0, 1, 1], [], []>} : vector<256x128xf32>, vector<128x2xf32>, vector<256x2xf32> -> vector<256x2xf32>
    %c0_9 = arith.constant 0 : index
    %c0_10 = arith.constant 0 : index
    %10 = vector.load %arg5[%c0_9, %c0_10] : memref<1x2xf32, #tpu.memory_space<vmem>>, vector<1x2xf32>
    %11 = vector.broadcast %10 : vector<1x2xf32> to vector<256x2xf32>
    %12 = arith.addf %9, %11 : vector<256x2xf32>
    %c0_11 = arith.constant 0 : index
    %c0_12 = arith.constant 0 : index
    %13 = vector.load %arg6[%c0_11, %c0_12] : memref<256x2xf32, #tpu.memory_space<vmem>>, vector<256x2xf32>
    tpu.vector_store %arg6[%c0_11, %c0_12], %12 {strides = array<i32>} : memref<256x2xf32, #tpu.memory_space<vmem>>, vector<256x2xf32>,
    return
  }
  func.func @transform_0(%arg0: i32) -> (i32, i32) {
    %c0_i32 = arith.constant 0 : i32
    %c0_i32_0 = arith.constant 0 : i32
    return %arg0, %c0_i32 : i32, i32
  }
  func.func @transform_1(%arg0: i32) -> (i32, i32) {
    %c0_i32 = arith.constant 0 : i32
    %c0_i32_0 = arith.constant 0 : i32
    %c0_i32_1 = arith.constant 0 : i32
    return %c0_i32, %c0_i32_0 : i32, i32
  }
  func.func @transform_2(%arg0: i32) -> (i32, i32) {
    %c0_i32 = arith.constant 0 : i32
    %c0_i32_0 = arith.constant 0 : i32
    %c0_i32_1 = arith.constant 0 : i32
    return %c0_i32, %c0_i32_0 : i32, i32
  }
  func.func @transform_3(%arg0: i32) -> (i32, i32) {
    %c0_i32 = arith.constant 0 : i32
    %c0_i32_0 = arith.constant 0 : i32
    %c0_i32_1 = arith.constant 0 : i32
    return %c0_i32, %c0_i32_0 : i32, i32
  }
  func.func @transform_4(%arg0: i32) -> (i32, i32) {
    %c0_i32 = arith.constant 0 : i32
    %c0_i32_0 = arith.constant 0 : i32
    %c0_i32_1 = arith.constant 0 : i32
    return %c0_i32, %c0_i32_0 : i32, i32
  }
  func.func @transform_5(%arg0: i32) -> (i32, i32) {
    %c0_i32 = arith.constant 0 : i32
    %c0_i32_0 = arith.constant 0 : i32
    return %arg0, %c0_i32 : i32, i32
  }
}

</mosaic_0001>

<bundles_post_ra>
// kernel: net_forward.1
= control target key start
LH: loop header
LB: loop body
LE: loop exit
PB: predicated region body
PF: predicated region fallthrough
CT: control target
= control target key end

     0   :  { %vm157_vm0 = vcmask 1043456   ;;  %vm60_vm1 = vcmask 31744   ;;  %vm666_vm2 = vcmask 15360   ;;  %s1408_s1 = inlined_call_operand.vmem [shape: f32[4,128], index: 1, kind: input, shape index: {}]   ;;  %s1409_s0 = inlined_call_operand.vmem [shape: f32[256,4], index: 0, kind: input, shape index: {}]   ;;  %s1410_s3 = inlined_call_operand.vmem [shape: f32[128,2], index: 3, kind: input, shape index: {}]   ;;  %s1411_s2 = inlined_call_operand.vmem [shape: f32[1,128], index: 2, kind: input, shape index: {}]   ;;  %s1412_s4 = inlined_call_operand.vmem [shape: f32[1,2], index: 4, kind: input, shape index: {}]   ;;  %s1413_s5 = inlined_call_operand.vmem [shape: f32[256,2], index: 5, kind: output, shape index: {}]  }
   0x1   :  { %v52_v0 = vld [vmem:[%s1408_s1] sm:$0xf]  ;;  %v21_v2 = vld [vmem:[%s1409_s0 + $0x8] sm:$0xff]  ;;  %v22_v3 = vld [vmem:[%s1409_s0 + $0x10] sm:$0xff] }
   0x2   :  { %v20_v1 = vld [vmem:[%s1409_s0] sm:$0xff]  ;;  %819 = vmatprep.subr.msk.mxu0 %vm157_vm0, %v52_v0  ;;  %v23_v4 = vld [vmem:[%s1409_s0 + $0x18] sm:$0xff]  ;;  %v25_v6 = vld [vmem:[%s1409_s0 + $0x28] sm:$0xff] }
   0x3   :  { %821 = vmatprep.mubr.msk.f32.mxu0 %vm60_vm1, %v20_v1  ;;  %820 = vmatpush3.msk.msra.mxu0 %vm157_vm0, %v52_v0  ;;  %v24_v5 = vld [vmem:[%s1409_s0 + $0x20] sm:$0xff]  ;;  %v26_v7 = vld [vmem:[%s1409_s0 + $0x30] sm:$0xff]  ;;  %v419_v9 = vld [vmem:[%s1410_s3 + $0x8] sm:$0xff] }
   0x4   :  { %822 = vmatmul.mubr.msk.f32.vlgmr.msra.gmra.mrb[0].mxu0 %vm60_vm1, %v21_v2  ;;  %v418_v8 = vld [vmem:[%s1410_s3] sm:$0xff]  ;;  %v420_v10 = vld [vmem:[%s1410_s3 + $0x10] sm:$0xff]  ;;  %v27_v11 = vld [vmem:[%s1409_s0 + $0x38] sm:$0xff] }
   0x5   :  { %824 = vmatprep.mubr.msk.f32.mxu0 %vm60_vm1, %v22_v3  ;;  %v949_v12 = vpack.c.bf16 %v419_v9, %v418_v8  ;;  %v421_v13 = vld [vmem:[%s1410_s3 + $0x18] sm:$0xff]  ;;  %v28_v14 = vld [vmem:[%s1409_s0 + $0x40] sm:$0xff]  ;;  %v423_v17 = vld [vmem:[%s1410_s3 + $0x28] sm:$0xff] }
   0x6   :  { %v953_v15 = vpack.c.bf16 %v421_v13, %v420_v10  ;;  %v422_v16 = vld [vmem:[%s1410_s3 + $0x20] sm:$0xff]  ;;  %v29_v18 = vld [vmem:[%s1409_s0 + $0x48] sm:$0xff]  ;;  %v30_v19 = vld [vmem:[%s1409_s0 + $0x50] sm:$0xff] }
   0x7   :  { %950 = vmatprep.subr.bf16.mxu0 %v949_v12  ;;  %981 = vmatprep.subr.bf16.mxu1 %v949_v12  ;;  %v957_v20 = vpack.c.bf16 %v423_v17, %v422_v16  ;;  %v424_v21 = vld [vmem:[%s1410_s3 + $0x30] sm:$0xff]  ;;  %v425_v22 = vld [vmem:[%s1410_s3 + $0x38] sm:$0xff]  ;;  %v32_v24 = vld [vmem:[%s1409_s0 + $0x60] sm:$0xff] }
   0x8   :  { %825 = vmatmul.mubr.msk.f32.gmra.mrb[2].mxu0 %vm60_vm1, %v23_v4  ;;  %989 = vmatpush3.bf16.msra.mxu1 %v949_v12  ;;  %v31_v23 = vld [vmem:[%s1409_s0 + $0x58] sm:$0xff]  ;;  %v961_v25 = vpack.c.bf16 %v425_v22, %v424_v21  ;;  %v426_v26 = vld [vmem:[%s1410_s3 + $0x40] sm:$0xff]  ;;  %v427_v27 = vld [vmem:[%s1410_s3 + $0x48] sm:$0xff] }
   0x9   :  { %827 = vmatprep.mubr.msk.f32.mxu0 %vm60_vm1, %v24_v5  ;;  %952 = vmatpush3.bf16.msra.mxu0 %v949_v12  ;;  %v33_v28 = vld [vmem:[%s1409_s0 + $0x68] sm:$0xff]  ;;  %v34_v29 = vld [vmem:[%s1409_s0 + $0x70] sm:$0xff]  ;;  %v965_v30 = vpack.c.bf16 %v427_v27, %v426_v26  ;;  %v429_v32 = vld [vmem:[%s1410_s3 + $0x58] sm:$0xff] }
   0xa   :  { %954 = vmatprep.subr.bf16.mxu0 %v953_v15  ;;  %982 = vmatprep.subr.bf16.mxu1 %v953_v15  ;;  %v428_v31 = vld [vmem:[%s1410_s3 + $0x50] sm:$0xff]  ;;  %v35_v33 = vld [vmem:[%s1409_s0 + $0x78] sm:$0xff]  ;;  %v36_v34 = vld [vmem:[%s1409_s0 + $0x80] sm:$0xff] }
   0xb   :  { %v969_v35 = vpack.c.bf16 %v429_v32, %v428_v31  ;;  %v430_v36 = vld [vmem:[%s1410_s3 + $0x60] sm:$0xff]  ;;  %v431_v37 = vld [vmem:[%s1410_s3 + $0x68] sm:$0xff]  ;;  %v38_v39 = vld [vmem:[%s1409_s0 + $0x90] sm:$0xff] }
   0xc   :  { %828 = vmatmul.mubr.msk.f32.gmra.mrb[4].mxu0 %vm60_vm1, %v25_v6  ;;  %990 = vmatpush3.bf16.msra.mxu1 %v953_v15  ;;  %v37_v38 = vld [vmem:[%s1409_s0 + $0x88] sm:$0xff]  ;;  %v973_v40 = vpack.c.bf16 %v431_v37, %v430_v36  ;;  %v39_v41 = vld [vmem:[%s1409_s0 + $0x98] sm:$0xff]  ;;  %v40_v42 = vld [vmem:[%s1409_s0 + $0xa0] sm:$0xff] }
   0xd   :  { %830 = vmatprep.mubr.msk.f32.mxu0 %vm60_vm1, %v26_v7  ;;  %956 = vmatpush3.bf16.msra.mxu0 %v953_v15  ;;  %v41_v43 = vld [vmem:[%s1409_s0 + $0xa8] sm:$0xff]  ;;  %v42_v44 = vld [vmem:[%s1409_s0 + $0xb0] sm:$0xff]  ;;  %v43_v45 = vld [vmem:[%s1409_s0 + $0xb8] sm:$0xff] }
   0xe   :  { %958 = vmatprep.subr.bf16.mxu0 %v957_v20  ;;  %983 = vmatprep.subr.bf16.mxu1 %v957_v20  ;;  %v44_v46 = vld [vmem:[%s1409_s0 + $0xc0] sm:$0xff]  ;;  %v45_v47 = vld [vmem:[%s1409_s0 + $0xc8] sm:$0xff]  ;;  %v46_v48 = vld [vmem:[%s1409_s0 + $0xd0] sm:$0xff] }
   0xf   :  { %v47_v49 = vld [vmem:[%s1409_s0 + $0xd8] sm:$0xff]  ;;  %v48_v50 = vld [vmem:[%s1409_s0 + $0xe0] sm:$0xff]  ;;  %v49_v51 = vld [vmem:[%s1409_s0 + $0xe8] sm:$0xff] }
  0x10   :  { %831 = vmatmul.mubr.msk.f32.gmra.mrb[6].mxu0 %vm60_vm1, %v27_v11  ;;  %991 = vmatpush3.bf16.msra.mxu1 %v957_v20  ;;  %v50_v52 = vld [vmem:[%s1409_s0 + $0xf0] sm:$0xff]  ;;  %v51_v53 = vld [vmem:[%s1409_s0 + $0xf8] sm:$0xff]  ;;  %v1209_v57 = vld [vmem:[%s1411_s2] ss:$0 sm:$0xff] }
  0x11   :  { %833 = vmatprep.mubr.msk.f32.mxu0 %vm60_vm1, %v28_v14  ;;  %960 = vmatpush3.bf16.msra.mxu0 %v957_v20  ;;  %v432_v54 = vld [vmem:[%s1410_s3 + $0x70] sm:$0xff]  ;;  %v433_v55 = vld [vmem:[%s1410_s3 + $0x78] sm:$0xff] }
  0x12   :  { %962 = vmatprep.subr.bf16.mxu0 %v961_v25  ;;  %984 = vmatprep.subr.bf16.mxu1 %v961_v25  ;;  %v977_v56 = vpack.c.bf16 %v433_v55, %v432_v54 }
  0x14   :  { %834 = vmatmul.mubr.msk.f32.gmra.mrb[8].mxu0 %vm60_vm1, %v29_v18  ;;  %992 = vmatpush3.bf16.msra.mxu1 %v961_v25 }
  0x15   :  { %836 = vmatprep.mubr.msk.f32.mxu0 %vm60_vm1, %v30_v19  ;;  %964 = vmatpush3.bf16.msra.mxu0 %v961_v25 }
  0x16   :  { %966 = vmatprep.subr.bf16.mxu0 %v965_v30  ;;  %985 = vmatprep.subr.bf16.mxu1 %v965_v30 }
  0x18   :  { %837 = vmatmul.mubr.msk.f32.gmra.mrb[10].mxu0 %vm60_vm1, %v31_v23  ;;  %993 = vmatpush3.bf16.msra.mxu1 %v965_v30 }
  0x19   :  { %839 = vmatprep.mubr.msk.f32.mxu0 %vm60_vm1, %v32_v24  ;;  %968 = vmatpush3.bf16.msra.mxu0 %v965_v30 }
  0x1a   :  { %970 = vmatprep.subr.bf16.mxu0 %v969_v35  ;;  %986 = vmatprep.subr.bf16.mxu1 %v969_v35 }
  0x1c   :  { %840 = vmatmul.mubr.msk.f32.gmra.mrb[12].mxu0 %vm60_vm1, %v33_v28  ;;  %994 = vmatpush3.bf16.msra.mxu1 %v969_v35 }
  0x1d   :  { %842 = vmatprep.mubr.msk.f32.mxu0 %vm60_vm1, %v34_v29  ;;  %972 = vmatpush3.bf16.msra.mxu0 %v969_v35 }
  0x1e   :  { %974 = vmatprep.subr.bf16.mxu0 %v973_v40  ;;  %987 = vmatprep.subr.bf16.mxu1 %v973_v40 }
  0x20   :  { %843 = vmatmul.mubr.msk.f32.gmra.mrb[14].mxu0 %vm60_vm1, %v35_v33  ;;  %995 = vmatpush3.bf16.msra.mxu1 %v973_v40 }
  0x21   :  { %845 = vmatprep.mubr.msk.f32.mxu0 %vm60_vm1, %v36_v34  ;;  %976 = vmatpush3.bf16.msra.mxu0 %v973_v40 }
  0x22   :  { %978 = vmatprep.subr.bf16.mxu0 %v977_v56  ;;  %988 = vmatprep.subr.bf16.mxu1 %v977_v56 }
  0x24   :  { %846 = vmatmul.mubr.msk.f32.gmra.mrb[16].mxu0 %vm60_vm1, %v37_v38  ;;  %996 = vmatpush3.bf16.msra.mxu1 %v977_v56 }
  0x25   :  { %848 = vmatprep.mubr.msk.f32.mxu0 %vm60_vm1, %v38_v39  ;;  %980 = vmatpush3.bf16.msra.mxu0 %v977_v56 }
  0x28   :  { %849 = vmatmul.mubr.msk.f32.gmra.mrb[18].mxu0 %vm60_vm1, %v39_v41 }
  0x29   :  { %851 = vmatprep.mubr.msk.f32.mxu0 %vm60_vm1, %v40_v42 }
  0x2c   :  { %852 = vmatmul.mubr.msk.f32.gmra.mrb[20].mxu0 %vm60_vm1, %v41_v43 }
  0x2d   :  { %854 = vmatprep.mubr.msk.f32.mxu0 %vm60_vm1, %v42_v44 }
  0x30   :  { %855 = vmatmul.mubr.msk.f32.gmra.mrb[22].mxu0 %vm60_vm1, %v43_v45 }
  0x31   :  { %857 = vmatprep.mubr.msk.f32.mxu0 %vm60_vm1, %v44_v46 }
  0x34   :  { %858 = vmatmul.mubr.msk.f32.gmra.mrb[24].mxu0 %vm60_vm1, %v45_v47 }
  0x35   :  { %860 = vmatprep.mubr.msk.f32.mxu0 %vm60_vm1, %v46_v48 }
  0x38   :  { %861 = vmatmul.mubr.msk.f32.gmra.mrb[26].mxu0 %vm60_vm1, %v47_v49 }
  0x39   :  { %863 = vmatprep.mubr.msk.f32.mxu0 %vm60_vm1, %v48_v50 }
  0x3c   :  { %864 = vmatmul.mubr.msk.f32.gmra.mrb[28].mxu0 %vm60_vm1, %v49_v51 }
  0x3d   :  { %866 = vmatprep.mubr.msk.f32.mxu0 %vm60_vm1, %v50_v52 }
  0x40   :  { %867 = vmatmul.mubr.msk.f32.gmra.mrb[30].mxu0 %vm60_vm1, %v51_v53 }
  0xd7   :  { %v823_v58 = vpop.f32.mrb[0].mxu0 }
  0xd8   :  { %v233_v59 = vadd.f32 %v823_v58, %v1209_v57  ;;  %v227_v60 = vpop.f32.mrb[1].mxu0 }
  0xd9   :  { %v228_v61 = vadd.f32 %v1209_v57, %v227_v60 }
  0xda   :  { %v387_v0 = vmax.f32 %v233_v59, 0.0 }
  0xdb   :  { %v386_v62 = vmax.f32 %v228_v61, 0.0  ;;  %v826_v63 = vpop.f32.mrb[2].mxu0 }
  0xdc   :  { %v243_v1 = vadd.f32 %v826_v63, %v1209_v57  ;;  %v237_v2 = vpop.f32.mrb[3].mxu0 }
  0xdd   :  { %v238_v3 = vadd.f32 %v1209_v57, %v237_v2  ;;  %901 = vmatprep.mubr.f32.mxu0 %v386_v62 }
  0xde   :  { %902 = vmatmul.mubr.f32.vlgmr.msra.gmra.mrb[32].mxu0 %v387_v0  ;;  %v389_v6 = vmax.f32 %v243_v1, 0.0 }
  0xdf   :  { %v388_v4 = vmax.f32 %v238_v3, 0.0  ;;  %v829_v5 = vpop.f32.mrb[4].mxu0 }
  0xe0   :  { %v253_v7 = vadd.f32 %v829_v5, %v1209_v57  ;;  %v247_v8 = vpop.f32.mrb[5].mxu0 }
  0xe1   :  { %v248_v9 = vadd.f32 %v1209_v57, %v247_v8  ;;  %904 = vmatprep.mubr.f32.mxu0 %v388_v4 }
  0xe2   :  { %905 = vmatmul.mubr.f32.gmra.mrb[34].mxu0 %v389_v6  ;;  %v391_v12 = vmax.f32 %v253_v7, 0.0 }
  0xe3   :  { %v390_v10 = vmax.f32 %v248_v9, 0.0  ;;  %v832_v11 = vpop.f32.mrb[6].mxu0 }
  0xe4   :  { %v263_v13 = vadd.f32 %v832_v11, %v1209_v57  ;;  %v257_v14 = vpop.f32.mrb[7].mxu0 }
  0xe5   :  { %907 = vmatprep.mubr.f32.mxu0 %v390_v10  ;;  %v258_v15 = vadd.f32 %v1209_v57, %v257_v14 }
  0xe6   :  { %908 = vmatmul.mubr.f32.gmra.mrb[36].mxu0 %v391_v12  ;;  %v393_v18 = vmax.f32 %v263_v13, 0.0 }
  0xe7   :  { %v835_v16 = vpop.f32.mrb[8].mxu0  ;;  %v392_v17 = vmax.f32 %v258_v15, 0.0 }
  0xe8   :  { %v273_v19 = vadd.f32 %v835_v16, %v1209_v57  ;;  %v267_v20 = vpop.f32.mrb[9].mxu0 }
  0xe9   :  { %v268_v21 = vadd.f32 %v1209_v57, %v267_v20  ;;  %910 = vmatprep.mubr.f32.mxu1 %v392_v17 }
  0xea   :  { %911 = vmatmul.mubr.f32.vlgmr.msra.gmra.mrb[0].mxu1 %v393_v18  ;;  %v395_v24 = vmax.f32 %v273_v19, 0.0 }
  0xeb   :  { %v394_v22 = vmax.f32 %v268_v21, 0.0  ;;  %v838_v23 = vpop.f32.mrb[10].mxu0 }
  0xec   :  { %v283_v25 = vadd.f32 %v838_v23, %v1209_v57  ;;  %v277_v26 = vpop.f32.mrb[11].mxu0 }
  0xed   :  { %v278_v27 = vadd.f32 %v1209_v57, %v277_v26  ;;  %913 = vmatprep.mubr.f32.mxu1 %v394_v22 }
  0xee   :  { %914 = vmatmul.mubr.f32.gmra.mrb[2].mxu1 %v395_v24  ;;  %v397_v30 = vmax.f32 %v283_v25, 0.0 }
  0xef   :  { %v396_v28 = vmax.f32 %v278_v27, 0.0  ;;  %v841_v29 = vpop.f32.mrb[12].mxu0  ;;  %v1246_v27 = vld [vmem:[%s1412_s4] ss:$0 sm:$0xff] }
  0xf0   :  { %v293_v31 = vadd.f32 %v841_v29, %v1209_v57  ;;  %v287_v32 = vpop.f32.mrb[13].mxu0 }
  0xf1   :  { %v288_v33 = vadd.f32 %v1209_v57, %v287_v32  ;;  %916 = vmatprep.mubr.f32.mxu1 %v396_v28 }
  0xf2   :  { %917 = vmatmul.mubr.f32.gmra.mrb[4].mxu1 %v397_v30  ;;  %v399_v36 = vmax.f32 %v293_v31, 0.0 }
  0xf3   :  { %v398_v34 = vmax.f32 %v288_v33, 0.0  ;;  %v844_v35 = vpop.f32.mrb[14].mxu0 }
  0xf4   :  { %v303_v37 = vadd.f32 %v844_v35, %v1209_v57  ;;  %v297_v38 = vpop.f32.mrb[15].mxu0 }
  0xf5   :  { %v298_v39 = vadd.f32 %v1209_v57, %v297_v38  ;;  %919 = vmatprep.mubr.f32.mxu1 %v398_v34 }
  0xf6   :  { %920 = vmatmul.mubr.f32.gmra.mrb[6].mxu1 %v399_v36  ;;  %v401_v42 = vmax.f32 %v303_v37, 0.0 }
  0xf7   :  { %v400_v40 = vmax.f32 %v298_v39, 0.0  ;;  %v847_v41 = vpop.f32.mrb[16].mxu0 }
  0xf8   :  { %v313_v43 = vadd.f32 %v847_v41, %v1209_v57  ;;  %v307_v44 = vpop.f32.mrb[17].mxu0 }
  0xf9   :  { %v308_v45 = vadd.f32 %v1209_v57, %v307_v44  ;;  %922 = vmatprep.mubr.f32.mxu1 %v400_v40 }
  0xfa   :  { %923 = vmatmul.mubr.f32.gmra.mrb[8].mxu1 %v401_v42  ;;  %v403_v48 = vmax.f32 %v313_v43, 0.0 }
  0xfb   :  { %v402_v46 = vmax.f32 %v308_v45, 0.0  ;;  %v850_v47 = vpop.f32.mrb[18].mxu0 }
  0xfc   :  { %v323_v49 = vadd.f32 %v850_v47, %v1209_v57  ;;  %v317_v50 = vpop.f32.mrb[19].mxu0 }
  0xfd   :  { %v318_v51 = vadd.f32 %v1209_v57, %v317_v50  ;;  %925 = vmatprep.mubr.f32.mxu1 %v402_v46 }
  0xfe   :  { %926 = vmatmul.mubr.f32.gmra.mrb[10].mxu1 %v403_v48  ;;  %v405_v54 = vmax.f32 %v323_v49, 0.0 }
  0xff   :  { %v404_v52 = vmax.f32 %v318_v51, 0.0  ;;  %v853_v53 = vpop.f32.mrb[20].mxu0 }
 0x100   :  { %v333_v55 = vadd.f32 %v853_v53, %v1209_v57  ;;  %v327_v56 = vpop.f32.mrb[21].mxu0 }
 0x101   :  { %v328_v58 = vadd.f32 %v1209_v57, %v327_v56  ;;  %928 = vmatprep.mubr.f32.mxu1 %v404_v52 }
 0x102   :  { %929 = vmatmul.mubr.f32.gmra.mrb[12].mxu1 %v405_v54  ;;  %v407_v61 = vmax.f32 %v333_v55, 0.0 }
 0x103   :  { %v406_v59 = vmax.f32 %v328_v58, 0.0  ;;  %v856_v60 = vpop.f32.mrb[22].mxu0 }
 0x104   :  { %v343_v62 = vadd.f32 %v856_v60, %v1209_v57  ;;  %v337_v63 = vpop.f32.mrb[23].mxu0 }
 0x105   :  { %v338_v0 = vadd.f32 %v1209_v57, %v337_v63  ;;  %931 = vmatprep.mubr.f32.mxu1 %v406_v59 }
 0x106   :  { %932 = vmatmul.mubr.f32.gmra.mrb[14].mxu1 %v407_v61  ;;  %v409_v3 = vmax.f32 %v343_v62, 0.0 }
 0x107   :  { %v408_v1 = vmax.f32 %v338_v0, 0.0  ;;  %v859_v2 = vpop.f32.mrb[24].mxu0 }
 0x108   :  { %v353_v4 = vadd.f32 %v859_v2, %v1209_v57  ;;  %v347_v5 = vpop.f32.mrb[25].mxu0 }
 0x109   :  { %v348_v6 = vadd.f32 %v1209_v57, %v347_v5  ;;  %934 = vmatprep.mubr.f32.mxu1 %v408_v1 }
 0x10a   :  { %935 = vmatmul.mubr.f32.gmra.mrb[16].mxu1 %v409_v3  ;;  %v411_v9 = vmax.f32 %v353_v4, 0.0 }
 0x10b   :  { %v410_v7 = vmax.f32 %v348_v6, 0.0  ;;  %v862_v8 = vpop.f32.mrb[26].mxu0 }
 0x10c   :  { %v363_v10 = vadd.f32 %v862_v8, %v1209_v57  ;;  %v357_v11 = vpop.f32.mrb[27].mxu0 }
 0x10d   :  { %v358_v12 = vadd.f32 %v1209_v57, %v357_v11  ;;  %937 = vmatprep.mubr.f32.mxu1 %v410_v7 }
 0x10e   :  { %938 = vmatmul.mubr.f32.gmra.mrb[18].mxu1 %v411_v9  ;;  %v413_v15 = vmax.f32 %v363_v10, 0.0 }
 0x10f   :  { %v412_v13 = vmax.f32 %v358_v12, 0.0  ;;  %v865_v14 = vpop.f32.mrb[28].mxu0 }
 0x110   :  { %v373_v16 = vadd.f32 %v865_v14, %v1209_v57  ;;  %v367_v17 = vpop.f32.mrb[29].mxu0 }
 0x111   :  { %v368_v18 = vadd.f32 %v1209_v57, %v367_v17  ;;  %940 = vmatprep.mubr.f32.mxu1 %v412_v13 }
 0x112   :  { %941 = vmatmul.mubr.f32.gmra.mrb[20].mxu1 %v413_v15  ;;  %v415_v21 = vmax.f32 %v373_v16, 0.0 }
 0x113   :  { %v414_v19 = vmax.f32 %v368_v18, 0.0  ;;  %v868_v20 = vpop.f32.mrb[30].mxu0 }
 0x114   :  { %v383_v22 = vadd.f32 %v868_v20, %v1209_v57  ;;  %v377_v23 = vpop.f32.mrb[31].mxu0 }
 0x115   :  { %v378_v24 = vadd.f32 %v1209_v57, %v377_v23  ;;  %943 = vmatprep.mubr.f32.mxu1 %v414_v19 }
 0x116   :  { %944 = vmatmul.mubr.f32.gmra.mrb[22].mxu1 %v415_v21  ;;  %v417_v26 = vmax.f32 %v383_v22, 0.0 }
 0x117   :  { %v416_v25 = vmax.f32 %v378_v24, 0.0 }
 0x119   :  { %946 = vmatprep.mubr.f32.mxu1 %v416_v25 }
 0x11a   :  { %947 = vmatmul.mubr.f32.gmra.mrb[24].mxu1 %v417_v26 }
 0x1b1   :  { %v903_v28 = vpop.f32.mrb[32].mxu0 }
 0x1b2   :  { %v513_v29 = vadd.f32 %v903_v28, %v1246_v27  ;;  %v507_v30 = vpop.f32.mrb[33].mxu0 }
 0x1b3   :  { %v508_v31 = vadd.f32 %v1246_v27, %v507_v30 }
 0x1b4   :  { %668 = vst.msk [vmem:[%s1413_s5 + $0x8] sm:$0xff] %vm666_vm2, %v513_v29 }
 0x1b5   :  { %667 = vst.msk [vmem:[%s1413_s5] sm:$0xff] %vm666_vm2, %v508_v31  ;;  %v906_v57 = vpop.f32.mrb[34].mxu0 }
 0x1b6   :  { %v523_v32 = vadd.f32 %v906_v57, %v1246_v27  ;;  %v517_v33 = vpop.f32.mrb[35].mxu0 }
 0x1b7   :  { %v518_v34 = vadd.f32 %v1246_v27, %v517_v33 }
 0x1b8   :  { %670 = vst.msk [vmem:[%s1413_s5 + $0x18] sm:$0xff] %vm666_vm2, %v523_v32 }
 0x1b9   :  { %669 = vst.msk [vmem:[%s1413_s5 + $0x10] sm:$0xff] %vm666_vm2, %v518_v34  ;;  %v909_v35 = vpop.f32.mrb[36].mxu0 }
 0x1ba   :  { %v533_v36 = vadd.f32 %v909_v35, %v1246_v27  ;;  %v527_v37 = vpop.f32.mrb[37].mxu0 }
 0x1bb   :  { %v528_v38 = vadd.f32 %v1246_v27, %v527_v37 }
 0x1bc   :  { %672 = vst.msk [vmem:[%s1413_s5 + $0x28] sm:$0xff] %vm666_vm2, %v533_v36 }
 0x1bd   :  { %671 = vst.msk [vmem:[%s1413_s5 + $0x20] sm:$0xff] %vm666_vm2, %v528_v38  ;;  %v912_v39 = vpop.f32.mrb[0].mxu1 }
 0x1be   :  { %v543_v40 = vadd.f32 %v912_v39, %v1246_v27  ;;  %v537_v41 = vpop.f32.mrb[1].mxu1 }
 0x1bf   :  { %v538_v42 = vadd.f32 %v1246_v27, %v537_v41 }
 0x1c0   :  { %674 = vst.msk [vmem:[%s1413_s5 + $0x38] sm:$0xff] %vm666_vm2, %v543_v40 }
 0x1c1   :  { %673 = vst.msk [vmem:[%s1413_s5 + $0x30] sm:$0xff] %vm666_vm2, %v538_v42  ;;  %v915_v43 = vpop.f32.mrb[2].mxu1 }
 0x1c2   :  { %v553_v44 = vadd.f32 %v915_v43, %v1246_v27  ;;  %v547_v45 = vpop.f32.mrb[3].mxu1 }
 0x1c3   :  { %v548_v46 = vadd.f32 %v1246_v27, %v547_v45 }
 0x1c4   :  { %676 = vst.msk [vmem:[%s1413_s5 + $0x48] sm:$0xff] %vm666_vm2, %v553_v44 }
 0x1c5   :  { %675 = vst.msk [vmem:[%s1413_s5 + $0x40] sm:$0xff] %vm666_vm2, %v548_v46  ;;  %v918_v47 = vpop.f32.mrb[4].mxu1 }
 0x1c6   :  { %v563_v48 = vadd.f32 %v918_v47, %v1246_v27  ;;  %v557_v49 = vpop.f32.mrb[5].mxu1 }
 0x1c7   :  { %v558_v50 = vadd.f32 %v1246_v27, %v557_v49 }
 0x1c8   :  { %678 = vst.msk [vmem:[%s1413_s5 + $0x58] sm:$0xff] %vm666_vm2, %v563_v48 }
 0x1c9   :  { %677 = vst.msk [vmem:[%s1413_s5 + $0x50] sm:$0xff] %vm666_vm2, %v558_v50  ;;  %v921_v51 = vpop.f32.mrb[6].mxu1 }
 0x1ca   :  { %v573_v52 = vadd.f32 %v921_v51, %v1246_v27  ;;  %v567_v53 = vpop.f32.mrb[7].mxu1 }
 0x1cb   :  { %v568_v54 = vadd.f32 %v1246_v27, %v567_v53 }
 0x1cc   :  { %680 = vst.msk [vmem:[%s1413_s5 + $0x68] sm:$0xff] %vm666_vm2, %v573_v52 }
 0x1cd   :  { %679 = vst.msk [vmem:[%s1413_s5 + $0x60] sm:$0xff] %vm666_vm2, %v568_v54  ;;  %v924_v55 = vpop.f32.mrb[8].mxu1 }
 0x1ce   :  { %v583_v56 = vadd.f32 %v924_v55, %v1246_v27  ;;  %v577_v58 = vpop.f32.mrb[9].mxu1 }
 0x1cf   :  { %v578_v59 = vadd.f32 %v1246_v27, %v577_v58 }
 0x1d0   :  { %682 = vst.msk [vmem:[%s1413_s5 + $0x78] sm:$0xff] %vm666_vm2, %v583_v56 }
 0x1d1   :  { %681 = vst.msk [vmem:[%s1413_s5 + $0x70] sm:$0xff] %vm666_vm2, %v578_v59  ;;  %v927_v60 = vpop.f32.mrb[10].mxu1 }
 0x1d2   :  { %v593_v61 = vadd.f32 %v927_v60, %v1246_v27  ;;  %v587_v62 = vpop.f32.mrb[11].mxu1 }
 0x1d3   :  { %v588_v63 = vadd.f32 %v1246_v27, %v587_v62 }
 0x1d4   :  { %684 = vst.msk [vmem:[%s1413_s5 + $0x88] sm:$0xff] %vm666_vm2, %v593_v61 }
 0x1d5   :  { %683 = vst.msk [vmem:[%s1413_s5 + $0x80] sm:$0xff] %vm666_vm2, %v588_v63  ;;  %v930_v0 = vpop.f32.mrb[12].mxu1 }
 0x1d6   :  { %v603_v1 = vadd.f32 %v930_v0, %v1246_v27  ;;  %v597_v2 = vpop.f32.mrb[13].mxu1 }
 0x1d7   :  { %v598_v3 = vadd.f32 %v1246_v27, %v597_v2 }
 0x1d8   :  { %686 = vst.msk [vmem:[%s1413_s5 + $0x98] sm:$0xff] %vm666_vm2, %v603_v1 }
 0x1d9   :  { %685 = vst.msk [vmem:[%s1413_s5 + $0x90] sm:$0xff] %vm666_vm2, %v598_v3  ;;  %v933_v4 = vpop.f32.mrb[14].mxu1 }
 0x1da   :  { %v613_v5 = vadd.f32 %v933_v4, %v1246_v27  ;;  %v607_v6 = vpop.f32.mrb[15].mxu1 }
 0x1db   :  { %v608_v7 = vadd.f32 %v1246_v27, %v607_v6 }
 0x1dc   :  { %688 = vst.msk [vmem:[%s1413_s5 + $0xa8] sm:$0xff] %vm666_vm2, %v613_v5 }
 0x1dd   :  { %687 = vst.msk [vmem:[%s1413_s5 + $0xa0] sm:$0xff] %vm666_vm2, %v608_v7  ;;  %v936_v8 = vpop.f32.mrb[16].mxu1 }
 0x1de   :  { %v623_v9 = vadd.f32 %v936_v8, %v1246_v27  ;;  %v617_v10 = vpop.f32.mrb[17].mxu1 }
 0x1df   :  { %v618_v11 = vadd.f32 %v1246_v27, %v617_v10 }
 0x1e0   :  { %690 = vst.msk [vmem:[%s1413_s5 + $0xb8] sm:$0xff] %vm666_vm2, %v623_v9 }
 0x1e1   :  { %689 = vst.msk [vmem:[%s1413_s5 + $0xb0] sm:$0xff] %vm666_vm2, %v618_v11  ;;  %v939_v12 = vpop.f32.mrb[18].mxu1 }
 0x1e2   :  { %v633_v13 = vadd.f32 %v939_v12, %v1246_v27  ;;  %v627_v14 = vpop.f32.mrb[19].mxu1 }
 0x1e3   :  { %v628_v15 = vadd.f32 %v1246_v27, %v627_v14 }
 0x1e4   :  { %692 = vst.msk [vmem:[%s1413_s5 + $0xc8] sm:$0xff] %vm666_vm2, %v633_v13 }
 0x1e5   :  { %691 = vst.msk [vmem:[%s1413_s5 + $0xc0] sm:$0xff] %vm666_vm2, %v628_v15  ;;  %v942_v16 = vpop.f32.mrb[20].mxu1 }
 0x1e6   :  { %v643_v17 = vadd.f32 %v942_v16, %v1246_v27  ;;  %v637_v18 = vpop.f32.mrb[21].mxu1 }
 0x1e7   :  { %v638_v19 = vadd.f32 %v1246_v27, %v637_v18 }
 0x1e8   :  { %694 = vst.msk [vmem:[%s1413_s5 + $0xd8] sm:$0xff] %vm666_vm2, %v643_v17 }
 0x1e9   :  { %693 = vst.msk [vmem:[%s1413_s5 + $0xd0] sm:$0xff] %vm666_vm2, %v638_v19  ;;  %v945_v20 = vpop.f32.mrb[22].mxu1 }
 0x1ea   :  { %v653_v21 = vadd.f32 %v945_v20, %v1246_v27  ;;  %v647_v22 = vpop.f32.mrb[23].mxu1 }
 0x1eb   :  { %v648_v23 = vadd.f32 %v1246_v27, %v647_v22 }
 0x1ec   :  { %696 = vst.msk [vmem:[%s1413_s5 + $0xe8] sm:$0xff] %vm666_vm2, %v653_v21 }
 0x1ed   :  { %695 = vst.msk [vmem:[%s1413_s5 + $0xe0] sm:$0xff] %vm666_vm2, %v648_v23  ;;  %v948_v24 = vpop.f32.mrb[24].mxu1 }
 0x1ee   :  { %v663_v25 = vadd.f32 %v948_v24, %v1246_v27  ;;  %v657_v26 = vpop.f32.mrb[25].mxu1 }
 0x1ef   :  { %v658_v28 = vadd.f32 %v1246_v27, %v657_v26 }
 0x1f0   :  { %698 = vst.msk [vmem:[%s1413_s5 + $0xf8] sm:$0xff] %vm666_vm2, %v663_v25 }
 0x1f1   :  { %697 = vst.msk [vmem:[%s1413_s5 + $0xf0] sm:$0xff] %vm666_vm2, %v658_v28 }

</bundles_post_ra>
